<compile_context>
chip_gen: v7x
topology: tpu7x:2x2x1
jax: 0.10.0
libtpu: 0.0.40
codegen_flags: <defaults>
</compile_context>

<pallas_src>
import functools

import jax
import jax.numpy as jnp
from jax.experimental import pallas as pl
from jax.experimental.pallas import tpu as pltpu


# Scoped-VMEM request: generous headroom on v5e (16 MiB default) while staying
# within v7x's 64 MiB physical VMEM.  The tiles below use only ~3 MiB
# double-buffered.
_VMEM_LIMIT_BYTES = 32 * 1024 * 1024


def _pick_tile(dim, target, align):
    """Largest `align`-aligned tile <= target that divides `dim`.

    Falls back to the full dimension (block dim == array dim is always legal).
    """
    if dim <= target:
        return dim
    t = (target // align) * align
    while t >= align:
        if dim % t == 0:
            return t
        t -= align
    return dim


# ----------------------------------------------------------------------------
# Tiled linear (matmul + bias) kernel
# ----------------------------------------------------------------------------
def _matmul_bias_kernel(x_ref, w_ref, b_ref, o_ref, acc_ref):
    @pl.when(pl.program_id(2) == 0)
    def _init():
        acc_ref[...] = jnp.zeros_like(acc_ref)

    acc_ref[...] += jnp.dot(x_ref[...], w_ref[...],
                            preferred_element_type=jnp.float32)

    @pl.when(pl.program_id(2) == pl.num_programs(2) - 1)
    def _finalize():
        o_ref[...] = (acc_ref[...] + b_ref[...]).astype(o_ref.dtype)


def _linear(x2d, w_t, b, *, tm=256, tn=256, tk=512):
    """x2d: (M, K), w_t: (K, N) [in, out], b: (N,) -> (M, N), tiled + pipelined."""
    M, K = x2d.shape
    K2, N = w_t.shape
    assert K2 == K
    tm = _pick_tile(M, tm, 8)      # sublane dim of x / out
    tn = _pick_tile(N, tn, 128)    # lane dim of w / out
    tk = _pick_tile(K, tk, 128)    # lane dim of x, sublane dim of w
    grid = (M // tm, N // tn, K // tk)

    itemsize = jnp.dtype(x2d.dtype).itemsize
    cost = pl.CostEstimate(
        flops=int(2 * M * N * K),
        transcendentals=0,
        bytes_accessed=int(itemsize * (M * K + K * N + M * N + N)))

    return pl.pallas_call(
        _matmul_bias_kernel,
        out_shape=jax.ShapeDtypeStruct((M, N), x2d.dtype),
        grid_spec=pltpu.PrefetchScalarGridSpec(
            num_scalar_prefetch=0,
            grid=grid,
            in_specs=[
                pl.BlockSpec((tm, tk), lambda i, j, k: (i, k)),
                pl.BlockSpec((tk, tn), lambda i, j, k: (k, j)),
                pl.BlockSpec((1, tn), lambda i, j, k: (0, j)),
            ],
            out_specs=pl.BlockSpec((tm, tn), lambda i, j, k: (i, j)),
            scratch_shapes=[pltpu.VMEM((tm, tn), jnp.float32)],
        ),
        compiler_params=pltpu.CompilerParams(
            dimension_semantics=("parallel", "parallel", "arbitrary"),
            vmem_limit_bytes=_VMEM_LIMIT_BYTES),
        cost_estimate=cost,
    )(x2d, w_t, b.reshape(1, N))


# ----------------------------------------------------------------------------
# Attention kernel (one (batch, head-group) block per grid step)
# ----------------------------------------------------------------------------
def _attention_kernel(q_ref, k_ref, v_ref, *rest, scale, has_mask, num_heads):
    if has_mask:
        mask_ref, o_ref, attn_ref = rest
    else:
        o_ref, attn_ref = rest

    # Heads in the group are processed with a statically-unrolled loop of 2-D
    # MXU matmuls (robust lowering; the per-head slices stay inside VMEM so no
    # HBM transposes are needed anywhere).
    for h in range(num_heads):
        q = q_ref[:, h, :]                      # (Sq, D)
        k = k_ref[:, h, :]                      # (Sk, D)
        v = v_ref[:, h, :]                      # (Sk, D)

        # Contract the D axes directly -- no k.T materialized.
        energy = jax.lax.dot_general(
            q, k,
            dimension_numbers=(((1,), (1,)), ((), ())),
            preferred_element_type=jnp.float32) * scale          # (Sq, Sk)

        if has_mask:
            energy = jnp.where(mask_ref[h] == 0.0, -1e20, energy)

        # Numerically stable softmax; the denominator reciprocal goes to the
        # EUP slot instead of a full-width VPU divide.
        m = jnp.max(energy, axis=-1, keepdims=True)
        e = jnp.exp(energy - m)
        denom = jnp.sum(e, axis=-1, keepdims=True)
        attn = e * pl.reciprocal(denom, approx=True)

        attn_ref[h] = attn.astype(attn_ref.dtype)
        ctx = jnp.dot(attn.astype(v.dtype), v,
                      preferred_element_type=jnp.float32)        # (Sq, D)
        o_ref[:, h, :] = ctx.astype(o_ref.dtype)


def _attention(q, k, v, mask=None, *, head_block=None):
    """Attention over (B, S, NH, D)-layout tensors (heads NOT transposed out).

    Either `q`, `k`, `v` are three (B, S, NH, D) arrays, or they are all the
    SAME fused (B, S, 3, NH, D) array (output of the fused QKV projection); in
    the fused case the BlockSpecs select the Q/K/V plane directly, so no
    slicing copies are ever materialized in HBM.

    Returns (out (B, Sq, NH, D), attention (B, NH, Sq, Sk)).
    """
    fused = q.ndim == 5
    if fused:
        B, Sq, _, NH, D = q.shape
        Sk = Sq
    else:
        B, Sq, NH, D = q.shape
        Sk = k.shape[1]

    # Head-group size: default = all heads per step.  A smaller group must
    # divide NH and be 8-aligned to satisfy the (8, 128) block-tiling rule.
    GH = NH if head_block is None else min(head_block, NH)
    if NH % GH or (GH != NH and GH % 8):
        GH = NH
    grid = (B, NH // GH)
    scale = 1.0 / float(D) ** 0.5

    if fused:
        q_spec = pl.BlockSpec((None, Sq, None, GH, D), lambda b, g: (b, 0, 0, g, 0))
        k_spec = pl.BlockSpec((None, Sk, None, GH, D), lambda b, g: (b, 0, 1, g, 0))
        v_spec = pl.BlockSpec((None, Sk, None, GH, D), lambda b, g: (b, 0, 2, g, 0))
    else:
        q_spec = pl.BlockSpec((None, Sq, GH, D), lambda b, g: (b, 0, g, 0))
        k_spec = pl.BlockSpec((None, Sk, GH, D), lambda b, g: (b, 0, g, 0))
        v_spec = pl.BlockSpec((None, Sk, GH, D), lambda b, g: (b, 0, g, 0))

    in_specs = [q_spec, k_spec, v_spec]
    inputs = [q, k, v]
    has_mask = mask is not None
    if has_mask:
        mask_f = jnp.broadcast_to(mask, (B, NH, Sq, Sk)).astype(jnp.float32)
        in_specs.append(pl.BlockSpec((None, GH, Sq, Sk), lambda b, g: (b, g, 0, 0)))
        inputs.append(mask_f)

    kernel = functools.partial(_attention_kernel, scale=scale,
                               has_mask=has_mask, num_heads=GH)
    itemsize = jnp.dtype(q.dtype).itemsize
    cost = pl.CostEstimate(
        flops=int(4 * B * NH * Sq * Sk * D),
        transcendentals=int(B * NH * Sq * Sk),
        bytes_accessed=int(itemsize * (3 * B * Sk * NH * D + B * Sq * NH * D)
                           + 4 * B * NH * Sq * Sk))

    out, attn = pl.pallas_call(
        kernel,
        out_shape=(
            jax.ShapeDtypeStruct((B, Sq, NH, D), q.dtype),       # attn @ V (head-interleaved)
            jax.ShapeDtypeStruct((B, NH, Sq, Sk), jnp.float32),  # attention weights
        ),
        grid=grid,
        in_specs=in_specs,
        out_specs=(
            pl.BlockSpec((None, Sq, GH, D), lambda b, g: (b, 0, g, 0)),
            pl.BlockSpec((None, GH, Sq, Sk), lambda b, g: (b, g, 0, 0)),
        ),
        compiler_params=pltpu.CompilerParams(
            dimension_semantics=("parallel", "parallel"),
            vmem_limit_bytes=_VMEM_LIMIT_BYTES),
        cost_estimate=cost,
    )(*inputs)
    return out, attn


# ----------------------------------------------------------------------------
# Module wrapper
# ----------------------------------------------------------------------------
class MultiHeadAttentionPallas:
    def __init__(self, hidden_size, num_heads, prng_key):
        assert hidden_size % num_heads == 0
        self.hidden_size = hidden_size
        self.num_heads = num_heads
        self.head_dim = hidden_size // num_heads

        # Deterministic init (PyTorch nn.Linear-style uniform bound).
        bound = 1.0 / (hidden_size ** 0.5)
        keys = jax.random.split(prng_key, 8)

        def init_w(k):
            return jax.random.uniform(
                k, (hidden_size, hidden_size), jnp.float32, -bound, bound)

        def init_b(k):
            return jax.random.uniform(
                k, (hidden_size,), jnp.float32, -bound, bound)

        # Stored PyTorch-style [out, in] (for the pure-JAX reference).
        self.Wq, self.bq = init_w(keys[0]), init_b(keys[1])
        self.Wk, self.bk = init_w(keys[2]), init_b(keys[3])
        self.Wv, self.bv = init_w(keys[4]), init_b(keys[5])
        self.Wf, self.bf = init_w(keys[6]), init_b(keys[7])

        # Pre-transposed [in, out] copies (computed once, no per-call transpose)
        # plus the fused QKV weight/bias for the self-attention fast path.
        self.wq_t = self.Wq.T
        self.wk_t = self.Wk.T
        self.wv_t = self.Wv.T
        self.wf_t = self.Wf.T
        self.w_qkv_t = jnp.concatenate([self.wq_t, self.wk_t, self.wv_t], axis=1)
        self.b_qkv = jnp.concatenate([self.bq, self.bk, self.bv])

    def __call__(self, query, key, value, mask=None):
        B, Sq, H = query.shape
        Sk = key.shape[1]
        NH, D = self.num_heads, self.head_dim

        if query is key and key is value:
            # Fused QKV projection: one tiled matmul against [H, 3H]; the
            # attention kernel reads Q/K/V planes straight out of the fused
            # result (free reshape, no HBM slicing/transposes).
            qkv = _linear(query.reshape(B * Sq, H), self.w_qkv_t, self.b_qkv)
            qkv = qkv.reshape(B, Sq, 3, NH, D)
            out_h, attn = _attention(qkv, qkv, qkv, mask)
        else:
            Q = _linear(query.reshape(B * Sq, H), self.wq_t, self.bq)
            K = _linear(key.reshape(B * Sk, H), self.wk_t, self.bk)
            V = _linear(value.reshape(B * Sk, H), self.wv_t, self.bv)
            Qh = Q.reshape(B, Sq, NH, D)
            Kh = K.reshape(B, Sk, NH, D)
            Vh = V.reshape(B, Sk, NH, D)
            out_h, attn = _attention(Qh, Kh, Vh, mask)

        # out_h is already (B, Sq, NH, D) -> merging heads is a free reshape.
        merged = out_h.reshape(B * Sq, H)
        out = _linear(merged, self.wf_t, self.bf).reshape(B, Sq, H)
        return out, attn

    # Pure-JAX reference for correctness checking.
    def reference(self, query, key, value, mask=None):
        B, Sq, H = query.shape
        Sk = key.shape[1]
        NH, D = self.num_heads, self.head_dim
        Q = query @ self.Wq.T + self.bq
        K = key @ self.Wk.T + self.bk
        V = value @ self.Wv.T + self.bv
        Qh = Q.reshape(B, Sq, NH, D).transpose(0, 2, 1, 3)
        Kh = K.reshape(B, Sk, NH, D).transpose(0, 2, 1, 3)
        Vh = V.reshape(B, Sk, NH, D).transpose(0, 2, 1, 3)
        energy = jnp.einsum("bhqd,bhkd->bhqk", Qh, Kh) / (D ** 0.5)
        if mask is not None:
            energy = jnp.where(jnp.broadcast_to(mask, energy.shape) == 0,
                               -1e20, energy)
        attn = jax.nn.softmax(energy, axis=-1)
        out_h = jnp.einsum("bhqk,bhkd->bhqd", attn, Vh)
        merged = out_h.transpose(0, 2, 1, 3).reshape(B, Sq, H)
        out = merged @ self.Wf.T + self.bf
        return out, attn


if __name__ == "__main__":
    B, S, H, NH = 2, 8, 32, 4

    root = jax.random.PRNGKey(0)
    k_params, kq, kk, kv = jax.random.split(root, 4)

    mha = MultiHeadAttentionPallas(H, NH, k_params)

    # Tolerances account for the EUP approximate-reciprocal softmax
    # normalization (pl.reciprocal(approx=True)) used inside the kernel.
    TOL = dict(atol=5e-3, rtol=5e-3)

    # 1) Self-attention -> fused QKV projection path.
    x = jax.random.normal(kq, (B, S, H), jnp.float32)
    out1, attn1 = mha(x, x, x)
    out1 = jax.block_until_ready(out1)
    attn1 = jax.block_until_ready(attn1)
    ref_out1, ref_attn1 = mha.reference(x, x, x)
    assert out1.shape == (B, S, H)
    assert attn1.shape == (B, NH, S, S)
    assert jnp.allclose(out1, ref_out1, **TOL)
    assert jnp.allclose(attn1, ref_attn1, **TOL)

    # 2) Cross-attention (distinct q/k/v) -> separate tiled projections.
    q_in = x
    k_in = jax.random.normal(kk, (B, S, H), jnp.float32)
    v_in = jax.random.normal(kv, (B, S, H), jnp.float32)
    out2, attn2 = mha(q_in, k_in, v_in)
    out2 = jax.block_until_ready(out2)
    ref_out2, ref_attn2 = mha.reference(q_in, k_in, v_in)
    assert jnp.allclose(out2, ref_out2, **TOL)
    assert jnp.allclose(attn2, ref_attn2, **TOL)

    # 3) Masked self-attention (causal mask, masked_fill semantics).
    causal = jnp.tril(jnp.ones((S, S), jnp.float32))[None, None]  # (1,1,S,S)
    out3, attn3 = mha(x, x, x, causal)
    out3 = jax.block_until_ready(out3)
    ref_out3, ref_attn3 = mha.reference(x, x, x, causal)
    assert jnp.allclose(out3, ref_out3, **TOL)
    assert jnp.allclose(attn3, ref_attn3, **TOL)

    print("KERNEL_OK")
</pallas_src>

<mosaic_0001>
module attributes {stable_mosaic.version = 11 : i64} {
  func.func @_matmul_bias_kernel(%arg0: i32, %arg1: i32, %arg2: i32, %arg3: memref<16x32xf32, #tpu.memory_space<vmem>>, %arg4: memref<32x96xf32, #tpu.memory_space<vmem>>, %arg5: memref<1x96xf32, #tpu.memory_space<vmem>>, %arg6: memref<16x96xf32, #tpu.memory_space<vmem>>, %arg7: memref<16x96xf32, #tpu.memory_space<vmem>>) attributes {dimension_semantics = [#tpu.dimension_semantics<parallel>, #tpu.dimension_semantics<parallel>, #tpu.dimension_semantics<arbitrary>], iteration_bounds = array<i64: 1, 1, 1>, scalar_prefetch = 0 : i64, scratch_operands = 1 : i64, tpu.core_type = #tpu.core_type<tc>, window_params = [{transform_indices = @transform_0, window_bounds = array<i64: 16, 32>}, {transform_indices = @transform_1, window_bounds = array<i64: 32, 96>}, {transform_indices = @transform_2, window_bounds = array<i64: 1, 96>}, {transform_indices = @transform_3, window_bounds = array<i64: 16, 96>}]} {
    %c0_i32 = arith.constant 0 : i32
    %0 = arith.cmpi eq, %arg2, %c0_i32 : i32
    %1 = arith.extui %0 : i1 to i32
    %c0_i32_0 = arith.constant 0 : i32
    %2 = arith.cmpi ne, %1, %c0_i32_0 : i32
    scf.if %2 {
      %cst_10 = arith.constant 0.000000e+00 : f32
      %12 = vector.broadcast %cst_10 : f32 to vector<16x96xf32>
      %c0_11 = arith.constant 0 : index
      %c0_12 = arith.constant 0 : index
      %13 = vector.load %arg7[%c0_11, %c0_12] : memref<16x96xf32, #tpu.memory_space<vmem>>, vector<16x96xf32>
      tpu.vector_store %arg7[%c0_11, %c0_12], %12 {strides = array<i32>} : memref<16x96xf32, #tpu.memory_space<vmem>>, vector<16x96xf32>,
    } else {
    }
    %c0 = arith.constant 0 : index
    %c0_1 = arith.constant 0 : index
    %3 = vector.load %arg7[%c0, %c0_1] : memref<16x96xf32, #tpu.memory_space<vmem>>, vector<16x96xf32>
    %c0_2 = arith.constant 0 : index
    %c0_3 = arith.constant 0 : index
    %4 = vector.load %arg3[%c0_2, %c0_3] : memref<16x32xf32, #tpu.memory_space<vmem>>, vector<16x32xf32>
    %c0_4 = arith.constant 0 : index
    %c0_5 = arith.constant 0 : index
    %5 = vector.load %arg4[%c0_4, %c0_5] : memref<32x96xf32, #tpu.memory_space<vmem>>, vector<32x96xf32>
    %cst = arith.constant dense<0.000000e+00> : vector<16x96xf32>
    %6 = tpu.matmul %4, %5, %cst {dimension_numbers = #tpu.dot_dimension_numbers<[1], [0], [0], [1], [0, 0, 1, 1], [], []>} : vector<16x32xf32>, vector<32x96xf32>, vector<16x96xf32> -> vector<16x96xf32>
    %7 = arith.addf %3, %6 : vector<16x96xf32>
    %c0_6 = arith.constant 0 : index
    %c0_7 = arith.constant 0 : index
    %8 = vector.load %arg7[%c0_6, %c0_7] : memref<16x96xf32, #tpu.memory_space<vmem>>, vector<16x96xf32>
    tpu.vector_store %arg7[%c0_6, %c0_7], %7 {strides = array<i32>} : memref<16x96xf32, #tpu.memory_space<vmem>>, vector<16x96xf32>,
    %c0_i32_8 = arith.constant 0 : i32
    %9 = arith.cmpi eq, %arg2, %c0_i32_8 : i32
    %10 = arith.extui %9 : i1 to i32
    %c0_i32_9 = arith.constant 0 : i32
    %11 = arith.cmpi ne, %10, %c0_i32_9 : i32
    scf.if %11 {
      %c0_10 = arith.constant 0 : index
      %c0_11 = arith.constant 0 : index
      %12 = vector.load %arg7[%c0_10, %c0_11] : memref<16x96xf32, #tpu.memory_space<vmem>>, vector<16x96xf32>
      %c0_12 = arith.constant 0 : index
      %c0_13 = arith.constant 0 : index
      %13 = vector.load %arg5[%c0_12, %c0_13] : memref<1x96xf32, #tpu.memory_space<vmem>>, vector<1x96xf32>
      %14 = vector.broadcast %13 : vector<1x96xf32> to vector<16x96xf32>
      %15 = arith.addf %12, %14 : vector<16x96xf32>
      %c0_14 = arith.constant 0 : index
      %c0_15 = arith.constant 0 : index
      %16 = vector.load %arg6[%c0_14, %c0_15] : memref<16x96xf32, #tpu.memory_space<vmem>>, vector<16x96xf32>
      tpu.vector_store %arg6[%c0_14, %c0_15], %15 {strides = array<i32>} : memref<16x96xf32, #tpu.memory_space<vmem>>, vector<16x96xf32>,
    } else {
    }
    return
  }
  func.func @transform_0(%arg0: i32, %arg1: i32, %arg2: i32) -> (i32, i32) {
    %c0_i32 = arith.constant 0 : i32
    return %arg0, %arg2 : i32, i32
  }
  func.func @transform_1(%arg0: i32, %arg1: i32, %arg2: i32) -> (i32, i32) {
    %c0_i32 = arith.constant 0 : i32
    return %arg2, %arg1 : i32, i32
  }
  func.func @transform_2(%arg0: i32, %arg1: i32, %arg2: i32) -> (i32, i32) {
    %c0_i32 = arith.constant 0 : i32
    %c0_i32_0 = arith.constant 0 : i32
    return %c0_i32, %arg1 : i32, i32
  }
  func.func @transform_3(%arg0: i32, %arg1: i32, %arg2: i32) -> (i32, i32) {
    %c0_i32 = arith.constant 0 : i32
    return %arg0, %arg1 : i32, i32
  }
}

</mosaic_0001>

<bundles_post_ra>
// kernel: tpu_custom_call.1
= control target key start
LH: loop header
LB: loop body
LE: loop exit
PB: predicated region body
PF: predicated region fallthrough
CT: control target
= control target key end

     0   :  { %8 = vsyncpa [#allocation4], 0  ;;  %s365_s0 = inlined_call_operand.hbm [shape: f32[16,32], index: 0, kind: input, shape index: {}]   ;;  %s366_s1 = inlined_call_operand.hbm [shape: f32[32,96], index: 1, kind: input, shape index: {}]   ;;  %s367_s2 = inlined_call_operand.vmem [shape: f32[1,96], index: 2, kind: input, shape index: {}]   ;;  %s368_s3 = inlined_call_operand.hbm [shape: f32[16,96], index: 3, kind: output, shape index: {}]  }
   0x1   :  { %9 = vsyncpa [#allocation7], 0 }
   0x2   :  { %10 = vsyncpa [#allocation5], 0  ;;  %s285_s12 = smov [#allocation3]   ;;  %s213_s16 = scalar_lea.hbm %s365_s0, 256 }
   0x3   :  { %s16_s13 = sshll.u32 %s285_s12, 4  ;;  %p214_p0 = scmp.ne.s32.totalorder %s365_s0, %s213_s16  ;;  %s17_s13 = int_to_ptr.vmem [resolvable:$true] %s16_s13 }
   0x4   :  { %p217_p1 = scmp.lt.u32.totalorder %s213_s16, %s365_s0 }
   0x6   :  { %p219_p2 = pnand %p217_p1, %p214_p0 }
   0x8   :  { %222 = shalt.err (!%p219_p2)
}
   0x9   :  { %s223_s21 = scalar_lea.vmem %s17_s13, 256  ;;  %p228_p4 = scmp.lt.s32.totalorder %s17_s13, %s17_s13 }
   0xa   :  { %p224_p3 = scmp.ne.s32.totalorder %s17_s13, %s223_s21  ;;  %p229_p5 = scmp.lt.s32.totalorder %s223_s21, %s223_s21 }
   0xc   :  { %p230_p6 = por %p229_p5, %p228_p4 }
   0xe   :  { %p231_p7 = pnand %p230_p6, %p224_p3 }
  0x10   :  { %234 = shalt.err (!%p231_p7)
}
  0x11   :  { %s286_s22 = smov 128   ;;  %s287_s23 = smov 8  }
  0x12   :  { %22 = dma.hbm_to_vmem [thread:$0]  %s365_s0, 256, %s17_s13, [#allocation4], %s286_s22, %s286_s22, %s287_s23  }
  0x13   :  { %s288_s26 = smov [#allocation6]   ;;  %s235_s30 = scalar_lea.hbm %s366_s1, 512 }
  0x14   :  { %s28_s27 = sshll.u32 %s288_s26, 4  ;;  %p236_p8 = scmp.ne.s32.totalorder %s366_s1, %s235_s30  ;;  %s29_s27 = int_to_ptr.vmem [resolvable:$true] %s28_s27 }
  0x15   :  { %p239_p9 = scmp.lt.u32.totalorder %s235_s30, %s366_s1 }
  0x17   :  { %p241_p10 = pnand %p239_p9, %p236_p8 }
  0x19   :  { %244 = shalt.err (!%p241_p10)
}
  0x1a   :  { %s245_s8 = scalar_lea.vmem %s29_s27, 512  ;;  %p250_p12 = scmp.lt.s32.totalorder %s29_s27, %s29_s27 }
  0x1b   :  { %p246_p11 = scmp.ne.s32.totalorder %s29_s27, %s245_s8  ;;  %p251_p13 = scmp.lt.s32.totalorder %s245_s8, %s245_s8 }
  0x1d   :  { %p252_p0 = por %p251_p13, %p250_p12 }
  0x1f   :  { %p253_p1 = pnand %p252_p0, %p246_p11 }
  0x21   :  { %256 = shalt.err (!%p253_p1)
}
  0x22   :  { %34 = dma.hbm_to_vmem [thread:$0]  %s366_s1, 512, %s29_s27, [#allocation7], %s286_s22, %s286_s22, %s287_s23  }
  0x23   :  { %279 = dma.done.wait [#allocation4], 256  }
  0x24   :  { %280 = vsyncadd [#allocation4], 4294967040 }
  0x25   :  { %281 = dma.done.wait [#allocation7], 512  }
  0x26   :  { %282 = vsyncadd [#allocation7], 4294966784  ;;  %vm47_vm0 = vcmask 785408   ;;  %v289_v0 = vmov 0.0   ;;  %vm58_vm1 = vcmask 261120   ;;  %v54_v1 = vld [vmem:[#allocation6] sm:$0xff] }
  0x27   :  { %49 = vst.msk [vmem:[#allocation2 + $0x8] sm:$0xff] %vm47_vm0, %v289_v0  ;;  %48 = vst.msk [vmem:[#allocation2] sm:$0xff] %vm47_vm0, %v289_v0  ;;  %v55_v2 = vld [vmem:[#allocation6 + $0x8] sm:$0xff]  ;;  %v56_v3 = vld [vmem:[#allocation6 + $0x10] sm:$0xff]  ;;  %s290_s11 = smov [#allocation8]  }
  0x28   :  { %v199_v4 = vpack.c.bf16 %v55_v2, %v54_v1  ;;  %v57_v5 = vld [vmem:[#allocation6 + $0x18] sm:$0xff]  ;;  %v52_v6 = vld [vmem:[#allocation3] sm:$0xff]  ;;  %v181_v15 = vld [vmem:[%s367_s2] ss:$0 sm:$0xff]  ;;  %s166_s12 = sshll.u32 %s290_s11, 4  ;;  %s167_s12 = int_to_ptr.vmem [resolvable:$true] %s166_s12 }
  0x29   :  { %v203_v7 = vpack.c.bf16 %v57_v5, %v56_v3  ;;  %196 = vmatprep.mubr.msk.f32.mxu0 %vm58_vm1, %v52_v6  ;;  %v53_v8 = vld [vmem:[#allocation3 + $0x8] sm:$0xff]  ;;  %s257_s13 = scalar_lea.vmem %s167_s12, 256  ;;  %p262_p3 = scmp.lt.s32.totalorder %s167_s12, %s167_s12 }
  0x2a   :  { %200 = vmatprep.subr.bf16.mxu0 %v199_v4  ;;  %p258_p2 = scmp.ne.s32.totalorder %s167_s12, %s257_s13  ;;  %p263_p4 = scmp.lt.s32.totalorder %s257_s13, %s257_s13 }
  0x2b   :  { %202 = vmatpush3.bf16.msra.mxu0 %v199_v4 }
  0x2c   :  { %204 = vmatprep.subr.bf16.mxu0 %v203_v7  ;;  %p264_p5 = por %p263_p4, %p262_p3 }
  0x2e   :  { %v51_v9 = vld [vmem:[#allocation2 + $0x8] sm:$0xff]  ;;  %v50_v10 = vld [vmem:[#allocation2] sm:$0xff]  ;;  %p265_p6 = pnand %p264_p5, %p258_p2 }
  0x2f   :  { %206 = vmatpush3.bf16.msra.mxu0 %v203_v7 }
  0x32   :  { %197 = vmatmul.mubr.msk.f32.vlgmr.msra.gmra.mrb[0].mxu0 %vm58_vm1, %v53_v8 }
 0x105   :  { %v198_v11 = vpop.f32.mrb[0].mxu0 }
 0x106   :  { %v141_v12 = vadd.f32 %v198_v11, %v51_v9  ;;  %v131_v13 = vpop.f32.mrb[1].mxu0 }
 0x107   :  { %v140_v14 = vadd.f32 %v131_v13, %v50_v10 }
 0x108   :  { %144 = vst.msk [vmem:[#allocation2 + $0x8] sm:$0xff] %vm47_vm0, %v141_v12 }
 0x109   :  { %143 = vst.msk [vmem:[#allocation2] sm:$0xff] %vm47_vm0, %v140_v14 }
 0x10f   :  { %v149_v16 = vld [vmem:[#allocation2 + $0x8] sm:$0xff] }
 0x110   :  { %v148_v17 = vld [vmem:[#allocation2] sm:$0xff]  ;;  %v158_v18 = vadd.f32 %v181_v15, %v149_v16 }
 0x111   :  { %v157_v19 = vadd.f32 %v181_v15, %v148_v17 }
 0x112   :  { %160 = vst.msk [vmem:[#allocation8 + $0x8] sm:$0xff] %vm47_vm0, %v158_v18 }
 0x113   :  { %159 = vst.msk [vmem:[#allocation8] sm:$0xff] %vm47_vm0, %v157_v19 }
 0x114   :  { %268 = shalt.err (!%p265_p6)
}
 0x115   :  { %s269_s15 = scalar_lea.hbm %s368_s3, 256 }
 0x116   :  { %p270_p7 = scmp.ne.s32.totalorder %s368_s3, %s269_s15  ;;  %p273_p8 = scmp.lt.u32.totalorder %s269_s15, %s368_s3 }
 0x118   :  { %p275_p9 = pnand %p273_p8, %p270_p7 }
 0x11a   :  { %278 = shalt.err (!%p275_p9)
}
 0x11b   :  { %172 = dma.vmem_to_hbm [thread:$0]  %s167_s12, 256, %s368_s3, [#allocation5], %s286_s22, %s286_s22, %s287_s23  }
 0x11c   :  { %283 = dma.done.wait [#allocation5], 256  }
 0x11d   :  { %284 = vsyncadd [#allocation5], 4294967040 }
 0x11e   :  { %176 = vsyncpa [#allocation4], 1 }
 0x11f   :  { %177 = vsyncpa [#allocation7], 1 }
 0x120   :  { %178 = vsyncpa [#allocation5], 1 }

</bundles_post_ra>
